<compile_context>
chip_gen: v5e
topology: v5e:2x2
jax: 0.10.0
libtpu: 0.0.40
codegen_flags: <defaults>
</compile_context>

<pallas_src>
import math
import functools

import jax
import jax.numpy as jnp
from jax.experimental import pallas as pl
from jax.experimental.pallas import tpu as pltpu


def _pick_tile(dim, candidates):
    for c in candidates:
        if c <= dim and dim % c == 0:
            return c
    return dim


def _gelu(x):
    # TODO(synk): HF BERT uses exact erf GELU; tanh approximation used here.
    return 0.5 * x * (1.0 + jnp.tanh(0.7978845608028654 *
                                     (x + 0.044715 * x * x * x)))


def _vmem_limit(footprint_bytes):
    # Cap at 32 MiB so the request is safe on v7x (64 MiB/TC) as well as v5e/v6e.
    return int(min(32 * 1024 * 1024, max(8 * 1024 * 1024, 1.5 * footprint_bytes)))


# -------------------- dense: out = act(x @ w + b), single K pass --------------------

def _dense_kernel(x_ref, w_ref, b_ref, o_ref, *, activation):
    acc = jnp.dot(x_ref[...], w_ref[...], preferred_element_type=jnp.float32)
    acc = acc + b_ref[...]
    if activation == "relu":
        acc = jnp.maximum(acc, 0.0)
    elif activation == "tanh":
        acc = jnp.tanh(acc)
    elif activation == "gelu":
        acc = _gelu(acc)
    o_ref[...] = acc.astype(o_ref.dtype)


def dense(x, w, b, activation=None):
    """x:(M,K) bf16 @ w:(K,N) bf16 + b:(N,) f32 -> (M,N) bf16, tiled over M/N only."""
    M, K = x.shape
    N = w.shape[1]
    Np = ((N + 127) // 128) * 128
    if Np != N:                                   # pad narrow outputs lane-dense
        w = jnp.pad(w, ((0, 0), (0, Np - N)))
        b = jnp.pad(b, ((0, Np - N),))
    if x.dtype != jnp.bfloat16:
        x = x.astype(jnp.bfloat16)

    tm = M if M <= 256 else _pick_tile(M, (256, 128, 64, 32, 16, 8))
    tn = _pick_tile(Np, (1024, 512, 256, 128))
    b2 = b.reshape(1, Np).astype(jnp.float32)

    footprint = 2 * (tm * K * 2 + K * tn * 2 + tn * 4 + tm * tn * 2)
    out = pl.pallas_call(
        functools.partial(_dense_kernel, activation=activation),
        out_shape=jax.ShapeDtypeStruct((M, Np), jnp.bfloat16),
        grid=(M // tm, Np // tn),
        in_specs=[
            pl.BlockSpec((tm, K), lambda i, j: (i, 0)),
            pl.BlockSpec((K, tn), lambda i, j: (0, j)),
            pl.BlockSpec((1, tn), lambda i, j: (0, j)),
        ],
        out_specs=pl.BlockSpec((tm, tn), lambda i, j: (i, j)),
        compiler_params=pltpu.CompilerParams(
            dimension_semantics=("parallel", "parallel"),
            vmem_limit_bytes=_vmem_limit(footprint),
        ),
    )(x, w, b2)
    return out[:, :N] if Np != N else out


# -------------- dense + residual + LayerNorm fused (wo / wf epilogues) --------------

def _dense_ln_kernel(x_ref, w_ref, b_ref, res_ref, g_ref, bln_ref, o_ref):
    y = jnp.dot(x_ref[...], w_ref[...], preferred_element_type=jnp.float32)
    y = y + b_ref[...] + res_ref[...].astype(jnp.float32)
    mean = jnp.mean(y, axis=-1, keepdims=True)
    var = jnp.mean(jnp.square(y - mean), axis=-1, keepdims=True)
    inv = jax.lax.rsqrt(var + 1e-12)
    o_ref[...] = ((y - mean) * inv * g_ref[...] + bln_ref[...]).astype(o_ref.dtype)


def dense_add_layernorm(x, w, b, res, gamma, beta):
    """out = LayerNorm(x @ w + b + res); the full hidden width N fits in one block."""
    M, K = x.shape
    N = w.shape[1]
    if x.dtype != jnp.bfloat16:
        x = x.astype(jnp.bfloat16)
    tm = M if M <= 256 else _pick_tile(M, (256, 128, 64, 32, 16, 8))

    footprint = 2 * (tm * K * 2 + K * N * 2 + N * 4 + 2 * tm * N * 2 + 2 * N * 4)
    return pl.pallas_call(
        _dense_ln_kernel,
        out_shape=jax.ShapeDtypeStruct((M, N), jnp.bfloat16),
        grid=(M // tm,),
        in_specs=[
            pl.BlockSpec((tm, K), lambda i: (i, 0)),
            pl.BlockSpec((K, N), lambda i: (0, 0)),
            pl.BlockSpec((1, N), lambda i: (0, 0)),
            pl.BlockSpec((tm, N), lambda i: (i, 0)),
            pl.BlockSpec((1, N), lambda i: (0, 0)),
            pl.BlockSpec((1, N), lambda i: (0, 0)),
        ],
        out_specs=pl.BlockSpec((tm, N), lambda i: (i, 0)),
        compiler_params=pltpu.CompilerParams(
            dimension_semantics=("parallel",),
            vmem_limit_bytes=_vmem_limit(footprint),
        ),
    )(x, w, b.reshape(1, N).astype(jnp.float32), res,
      gamma.reshape(1, N).astype(jnp.float32),
      beta.reshape(1, N).astype(jnp.float32))


# ----------------------------- standalone LayerNorm (embeddings) -----------------------------

def _layernorm_kernel(x_ref, g_ref, b_ref, o_ref):
    x = x_ref[...].astype(jnp.float32)
    mean = jnp.mean(x, axis=-1, keepdims=True)
    var = jnp.mean(jnp.square(x - mean), axis=-1, keepdims=True)
    inv = jax.lax.rsqrt(var + 1e-12)
    o_ref[...] = ((x - mean) * inv * g_ref[...] + b_ref[...]).astype(o_ref.dtype)


def layernorm(x, gamma, beta):
    M, H = x.shape
    tm = M if M <= 512 else _pick_tile(M, (512, 256, 128, 64, 32, 16, 8))
    return pl.pallas_call(
        _layernorm_kernel,
        out_shape=jax.ShapeDtypeStruct((M, H), jnp.bfloat16),
        grid=(M // tm,),
        in_specs=[
            pl.BlockSpec((tm, H), lambda i: (i, 0)),
            pl.BlockSpec((1, H), lambda i: (0, 0)),
            pl.BlockSpec((1, H), lambda i: (0, 0)),
        ],
        out_specs=pl.BlockSpec((tm, H), lambda i: (i, 0)),
        compiler_params=pltpu.CompilerParams(dimension_semantics=("parallel",)),
    )(x, gamma.reshape(1, H).astype(jnp.float32),
      beta.reshape(1, H).astype(jnp.float32))


# ----------------------------- attention (heads split inside kernel) -----------------------------

def _attention_kernel(qkv_ref, mask_ref, o_ref, *, heads, d, hidden, scale):
    qkv = qkv_ref[0]                                            # (S, 3H) bf16
    neg = (1.0 - mask_ref[0]) * (-1e9)                          # (1, S) additive mask
    ctxs = []
    for h in range(heads):
        q = qkv[:, h * d:(h + 1) * d]                                   # (S, d) bf16
        k = qkv[:, hidden + h * d:hidden + (h + 1) * d]                 # (S, d) bf16
        v = qkv[:, 2 * hidden + h * d:2 * hidden + (h + 1) * d]         # (S, d) bf16
        scores = jax.lax.dot_general(q, k, (((1,), (1,)), ((), ())),
                                     preferred_element_type=jnp.float32) * scale
        scores = scores + neg
        smax = jnp.max(scores, axis=-1, keepdims=True)
        p = jnp.exp(scores - smax)
        denom = jnp.sum(p, axis=-1, keepdims=True)
        p = p * pl.reciprocal(denom, approx=True)
        ctx = jnp.dot(p.astype(jnp.bfloat16), v,
                      preferred_element_type=jnp.float32)               # (S, d) f32
        ctxs.append(ctx)
    # single lane-dense (S, H) store per batch instead of 16 masked 64-lane stores
    o_ref[0] = jnp.concatenate(ctxs, axis=-1).astype(o_ref.dtype)


def attention(qkv, mask, *, batch, seq, heads):
    """qkv: (B*S, 3H) bf16 fused projection output; mask: (B, S) float."""
    M, threeH = qkv.shape
    H = threeH // 3
    d = H // heads
    qkv3 = qkv.reshape(batch, seq, threeH)
    mask3 = mask.reshape(batch, 1, seq).astype(jnp.float32)
    out = pl.pallas_call(
        functools.partial(_attention_kernel, heads=heads, d=d, hidden=H,
                          scale=1.0 / math.sqrt(d)),
        out_shape=jax.ShapeDtypeStruct((batch, seq, H), jnp.bfloat16),
        grid=(batch,),
        in_specs=[
            pl.BlockSpec((1, seq, threeH), lambda b: (b, 0, 0)),
            pl.BlockSpec((1, 1, seq), lambda b: (b, 0, 0)),
        ],
        out_specs=pl.BlockSpec((1, seq, H), lambda b: (b, 0, 0)),
        compiler_params=pltpu.CompilerParams(dimension_semantics=("parallel",)),
    )(qkv3, mask3)
    return out.reshape(M, H)


# ----------------------------- fused pooler + classification head -----------------------------

def _pooler_head_kernel(cls_ref, pw_ref, pb_ref, hw_ref, hb_ref, o_ref):
    pooled = jnp.tanh(
        jnp.dot(cls_ref[...], pw_ref[...], preferred_element_type=jnp.float32)
        + pb_ref[...])
    # TODO(synk): dropout between pooler and head runs in eval mode (identity).
    logits = jnp.dot(pooled.astype(jnp.bfloat16), hw_ref[...],
                     preferred_element_type=jnp.float32) + hb_ref[...]
    o_ref[...] = jnp.maximum(logits, 0.0).astype(o_ref.dtype)


def pooler_head(cls, pool_w, pool_b, head_w, head_b):
    B, H = cls.shape
    Np = head_w.shape[1]
    if cls.dtype != jnp.bfloat16:
        cls = cls.astype(jnp.bfloat16)
    return pl.pallas_call(
        _pooler_head_kernel,
        out_shape=jax.ShapeDtypeStruct((B, Np), jnp.float32),
        grid=(1,),
        in_specs=[
            pl.BlockSpec((B, H), lambda i: (0, 0)),
            pl.BlockSpec((H, H), lambda i: (0, 0)),
            pl.BlockSpec((1, H), lambda i: (0, 0)),
            pl.BlockSpec((H, Np), lambda i: (0, 0)),
            pl.BlockSpec((1, Np), lambda i: (0, 0)),
        ],
        out_specs=pl.BlockSpec((B, Np), lambda i: (0, 0)),
        compiler_params=pltpu.CompilerParams(
            vmem_limit_bytes=_vmem_limit(2 * (B * H * 2 + H * H * 2 + H * Np * 2
                                              + (H + Np) * 4 + B * Np * 4)),
        ),
    )(cls, pool_w, pool_b.reshape(1, H).astype(jnp.float32),
      head_w, head_b.reshape(1, Np).astype(jnp.float32))


# ----------------------------- parameter init -----------------------------

def init_params(key, *, vocab=128, hidden=1024, layers=2, heads=16,
                inter=4096, max_pos=64, out_dim=5):
    def nrm(k, shape, std=0.02):
        return std * jax.random.normal(k, shape, dtype=jnp.float32)

    keys = iter(jax.random.split(key, 8 + layers * 8))
    head_w = nrm(next(keys), (hidden, out_dim))
    p = {
        "num_heads": heads,
        "out_dim": out_dim,
        "word_emb": nrm(next(keys), (vocab, hidden)),
        "pos_emb": nrm(next(keys), (max_pos, hidden)),
        "type_emb": nrm(next(keys), (2, hidden)),
        "emb_ln_g": jnp.ones((hidden,), jnp.float32),
        "emb_ln_b": jnp.zeros((hidden,), jnp.float32),
        "pool_w": nrm(next(keys), (hidden, hidden)).astype(jnp.bfloat16),
        "pool_b": jnp.zeros((hidden,), jnp.float32),
        "head_w": jnp.pad(head_w, ((0, 0), (0, 128 - out_dim))).astype(jnp.bfloat16),
        "head_b": jnp.zeros((128,), jnp.float32),
        "layers": [],
    }
    for _ in range(layers):
        wq = nrm(next(keys), (hidden, hidden))
        wk = nrm(next(keys), (hidden, hidden))
        wv = nrm(next(keys), (hidden, hidden))
        p["layers"].append({
            "wqkv": jnp.concatenate([wq, wk, wv], axis=1).astype(jnp.bfloat16),
            "bqkv": jnp.zeros((3 * hidden,), jnp.float32),
            "wo": nrm(next(keys), (hidden, hidden)).astype(jnp.bfloat16),
            "bo": jnp.zeros((hidden,), jnp.float32),
            "ln1_g": jnp.ones((hidden,), jnp.float32),
            "ln1_b": jnp.zeros((hidden,), jnp.float32),
            "wi": nrm(next(keys), (hidden, inter)).astype(jnp.bfloat16),
            "bi": jnp.zeros((inter,), jnp.float32),
            "wf": nrm(next(keys), (inter, hidden)).astype(jnp.bfloat16),
            "bf": jnp.zeros((hidden,), jnp.float32),
            "ln2_g": jnp.ones((hidden,), jnp.float32),
            "ln2_b": jnp.zeros((hidden,), jnp.float32),
        })
    return p


# ------------------------------ forward pass ------------------------------

def patent_model_forward(params, input_ids, mask):
    B, S = input_ids.shape
    H = params["word_emb"].shape[1]
    heads = params["num_heads"]

    # --- BERT embeddings (gathers stay in XLA, LN in Pallas emits bf16) ---
    # TODO(synk): token_type_ids fixed to segment A (index 0).
    emb = (params["word_emb"][input_ids]
           + params["pos_emb"][:S][None, :, :]
           + params["type_emb"][0][None, None, :])
    h = layernorm(emb.reshape(B * S, H), params["emb_ln_g"], params["emb_ln_b"])
    maskf = mask.astype(jnp.float32)

    # --- BERT encoder layers (activations stay bf16 end-to-end) ---
    for lyr in params["layers"]:
        qkv = dense(h, lyr["wqkv"], lyr["bqkv"])                        # (B*S, 3H)
        ctx = attention(qkv, maskf, batch=B, seq=S, heads=heads)        # (B*S, H)
        h = dense_add_layernorm(ctx, lyr["wo"], lyr["bo"], h,
                                lyr["ln1_g"], lyr["ln1_b"])             # fused LN
        inter = dense(h, lyr["wi"], lyr["bi"], activation="gelu")
        h = dense_add_layernorm(inter, lyr["wf"], lyr["bf"], h,
                                lyr["ln2_g"], lyr["ln2_b"])             # fused LN

    # --- pooler + dropout(eval) + Linear(1024,5) + ReLU fused ---
    cls = h.reshape(B, S, H)[:, 0, :]
    logits = pooler_head(cls, params["pool_w"], params["pool_b"],
                         params["head_w"], params["head_b"])
    return logits[:, :params["out_dim"]]


# ---------------------------------- main ----------------------------------

if __name__ == "__main__":
    key = jax.random.PRNGKey(0)
    pkey, ikey = jax.random.split(key)

    B, S, VOCAB = 2, 8, 128
    params = init_params(pkey, vocab=VOCAB, hidden=1024, layers=2, heads=16,
                         inter=4096, max_pos=64, out_dim=5)

    input_ids = jax.random.randint(ikey, (B, S), 0, VOCAB, dtype=jnp.int32)
    mask = jnp.array([[1, 1, 1, 1, 1, 1, 1, 1],
                      [1, 1, 1, 1, 1, 1, 0, 0]], dtype=jnp.int32)

    out = patent_model_forward(params, input_ids, mask)
    out = jax.block_until_ready(out)
    assert out.shape == (B, 5)
    assert bool(jnp.all(out >= 0.0))   # ReLU output is non-negative
    print("KERNEL_OK")
</pallas_src>

<mosaic_0001>
module attributes {stable_mosaic.version = 11 : i64} {
  func.func @_layernorm_kernel(%arg0: i32, %arg1: memref<16x1024xf32, #tpu.memory_space<vmem>>, %arg2: memref<1x1024xf32, #tpu.memory_space<vmem>>, %arg3: memref<1x1024xf32, #tpu.memory_space<vmem>>, %arg4: memref<16x1024xbf16, #tpu.memory_space<vmem>>) attributes {dimension_semantics = [#tpu.dimension_semantics<parallel>], iteration_bounds = array<i64: 1>, scalar_prefetch = 0 : i64, scratch_operands = 0 : i64, tpu.core_type = #tpu.core_type<tc>, window_params = [{transform_indices = @transform_0, window_bounds = array<i64: 16, 1024>}, {pipeline_mode = #tpu.pipeline_mode<synchronous>, transform_indices = @transform_1, window_bounds = array<i64: 1, 1024>}, {pipeline_mode = #tpu.pipeline_mode<synchronous>, transform_indices = @transform_2, window_bounds = array<i64: 1, 1024>}, {transform_indices = @transform_3, window_bounds = array<i64: 16, 1024>}]} {
    %c0 = arith.constant 0 : index
    %c0_0 = arith.constant 0 : index
    %0 = vector.load %arg1[%c0, %c0_0] : memref<16x1024xf32, #tpu.memory_space<vmem>>, vector<16x1024xf32>
    %cst = arith.constant dense<0.000000e+00> : vector<16xf32>
    %1 = vector.multi_reduction <add>, %0, %cst [1] : vector<16x1024xf32> to vector<16xf32>
    %2 = vector.shape_cast %1 : vector<16xf32> to vector<16x1xf32>
    %cst_1 = arith.constant 1.024000e+03 : f32
    %3 = vector.broadcast %cst_1 : f32 to vector<16x1xf32>
    %4 = arith.divf %2, %3 : vector<16x1xf32>
    %5 = vector.broadcast %4 : vector<16x1xf32> to vector<16x1024xf32>
    %6 = arith.subf %0, %5 : vector<16x1024xf32>
    %7 = arith.mulf %6, %6 : vector<16x1024xf32>
    %cst_2 = arith.constant dense<0.000000e+00> : vector<16xf32>
    %8 = vector.multi_reduction <add>, %7, %cst_2 [1] : vector<16x1024xf32> to vector<16xf32>
    %9 = vector.shape_cast %8 : vector<16xf32> to vector<16x1xf32>
    %cst_3 = arith.constant 1.024000e+03 : f32
    %10 = vector.broadcast %cst_3 : f32 to vector<16x1xf32>
    %11 = arith.divf %9, %10 : vector<16x1xf32>
    %cst_4 = arith.constant 9.99999996E-13 : f32
    %12 = vector.broadcast %cst_4 : f32 to vector<16x1xf32>
    %13 = arith.addf %11, %12 : vector<16x1xf32>
    %14 = math.rsqrt %13 : vector<16x1xf32>
    %15 = vector.broadcast %4 : vector<16x1xf32> to vector<16x1024xf32>
    %16 = arith.subf %0, %15 : vector<16x1024xf32>
    %17 = vector.broadcast %14 : vector<16x1xf32> to vector<16x1024xf32>
    %18 = arith.mulf %16, %17 : vector<16x1024xf32>
    %c0_5 = arith.constant 0 : index
    %c0_6 = arith.constant 0 : index
    %19 = vector.load %arg2[%c0_5, %c0_6] : memref<1x1024xf32, #tpu.memory_space<vmem>>, vector<1x1024xf32>
    %20 = vector.broadcast %19 : vector<1x1024xf32> to vector<16x1024xf32>
    %21 = arith.mulf %18, %20 : vector<16x1024xf32>
    %c0_7 = arith.constant 0 : index
    %c0_8 = arith.constant 0 : index
    %22 = vector.load %arg3[%c0_7, %c0_8] : memref<1x1024xf32, #tpu.memory_space<vmem>>, vector<1x1024xf32>
    %23 = vector.broadcast %22 : vector<1x1024xf32> to vector<16x1024xf32>
    %24 = arith.addf %21, %23 : vector<16x1024xf32>
    %25 = arith.truncf %24 : vector<16x1024xf32> to vector<16x1024xbf16>
    %c0_9 = arith.constant 0 : index
    %c0_10 = arith.constant 0 : index
    %26 = vector.load %arg4[%c0_9, %c0_10] : memref<16x1024xbf16, #tpu.memory_space<vmem>>, vector<16x1024xbf16>
    tpu.vector_store %arg4[%c0_9, %c0_10], %25 {strides = array<i32>} : memref<16x1024xbf16, #tpu.memory_space<vmem>>, vector<16x1024xbf16>,
    return
  }
  func.func @transform_0(%arg0: i32) -> (i32, i32) {
    %c0_i32 = arith.constant 0 : i32
    %c0_i32_0 = arith.constant 0 : i32
    return %arg0, %c0_i32 : i32, i32
  }
  func.func @transform_1(%arg0: i32) -> (i32, i32) {
    %c0_i32 = arith.constant 0 : i32
    %c0_i32_0 = arith.constant 0 : i32
    %c0_i32_1 = arith.constant 0 : i32
    return %c0_i32, %c0_i32_0 : i32, i32
  }
  func.func @transform_2(%arg0: i32) -> (i32, i32) {
    %c0_i32 = arith.constant 0 : i32
    %c0_i32_0 = arith.constant 0 : i32
    %c0_i32_1 = arith.constant 0 : i32
    return %c0_i32, %c0_i32_0 : i32, i32
  }
  func.func @transform_3(%arg0: i32) -> (i32, i32) {
    %c0_i32 = arith.constant 0 : i32
    %c0_i32_0 = arith.constant 0 : i32
    return %arg0, %c0_i32 : i32, i32
  }
}

</mosaic_0001>

<bundles_post_ra>
// kernel: tpu_custom_call.1
= control target key start
LH: loop header
LB: loop body
LE: loop exit
PB: predicated region body
PF: predicated region fallthrough
CT: control target
= control target key end

     0   :  { %8 = vsyncpa [#allocation3], 0  ;;  %s622_s0 = inlined_call_operand.hbm [shape: f32[16,1024], index: 0, kind: input, shape index: {}]   ;;  %s623_s1 = inlined_call_operand.hbm [shape: f32[1,1024], index: 1, kind: input, shape index: {}]   ;;  %s624_s2 = inlined_call_operand.hbm [shape: f32[1,1024], index: 2, kind: input, shape index: {}]   ;;  %s625_s3 = inlined_call_operand.hbm [shape: bf16[16,1024], index: 3, kind: output, shape index: {}]  }
   0x1   :  { %9 = vsyncpa [#allocation6], 0  ;;  %s29_s14 = sshll.u32 %s623_s1, 4  ;;  %s30_s14 = int_to_ptr.hbm [resolvable:$true] %s29_s14 }
   0x2   :  { %10 = vsyncpa [#allocation4], 0  ;;  %s412_s15 = smov [#allocation5]   ;;  %s15_s19 = sshll.u32 %s622_s0, 4  ;;  %s16_s19 = int_to_ptr.hbm [resolvable:$true] %s15_s19 }
   0x3   :  { %s31_s16 = sshll.u32 %s412_s15, 4  ;;  %s413_s20 = smov [#allocation2]   ;;  %s32_s16 = int_to_ptr.vmem [resolvable:$true] %s31_s16 }
   0x4   :  { %34 = dma.hbm_to_vmem [thread:$0]  %s30_s14, 128, %s32_s16, [#allocation6]  }
   0x5   :  { %s17_s21 = sshll.u32 %s413_s20, 4  ;;  %s414_s22 = smov 1024   ;;  %s18_s21 = int_to_ptr.vmem [resolvable:$true] %s17_s21 }
   0x6   :  { %s415_s23 = smov 64   ;;  %s40_s1 = sshll.u32 %s624_s2, 4  ;;  %s41_s1 = int_to_ptr.hbm [resolvable:$true] %s40_s1 }
   0x7   :  { %23 = dma.hbm_to_vmem [thread:$0]  %s16_s19, 2048, %s18_s21, [#allocation3], %s414_s22, %s414_s22, %s415_s23  }
   0x8   :  { %s416_s26 = smov [#allocation7]  }
   0x9   :  { %s42_s27 = sshll.u32 %s416_s26, 4  ;;  %s43_s27 = int_to_ptr.vmem [resolvable:$true] %s42_s27 }
   0xa   :  { %45 = dma.hbm_to_vmem [thread:$0]  %s41_s1, 128, %s43_s27, [#allocation6]  }
   0xb   :  { %406 = dma.done.wait [#allocation3], 2048  }
   0xc   :  { %407 = vsyncadd [#allocation3], 4294965248 }
   0xd   :  { %408 = dma.done.wait [#allocation6], 256  }
   0xe   :  { %409 = vsyncadd [#allocation6], 4294967040  ;;  %v58_v0 = vld [vmem:[#allocation2] sm:$0xff]  ;;  %v59_v1 = vld [vmem:[#allocation2 + $0x8] sm:$0xff]  ;;  %v417_v30 = vmov 1024.0   ;;  %s418_s0 = smov [#allocation8]  }
   0xf   :  { %v60_v2 = vld [vmem:[#allocation2 + $0x10] sm:$0xff]  ;;  %v74_v3 = vadd.f32 %v59_v1, %v58_v0  ;;  %v61_v4 = vld [vmem:[#allocation2 + $0x18] sm:$0xff]  ;;  %v66_v5 = vld [vmem:[#allocation2 + $0x40] sm:$0xff]  ;;  %304 = vrcp.f32 %v417_v30  ;;  %s279_s2 = sshll.u32 %s418_s0, 4  ;;  %s281_s30 = sshll.u32 %s625_s3, 4  ;;  %s280_s2 = int_to_ptr.vmem [resolvable:$true] %s279_s2  ;;  %s282_s30 = int_to_ptr.hbm [resolvable:$true] %s281_s30 }
  0x10   :  { %v67_v7 = vld [vmem:[#allocation2 + $0x48] sm:$0xff]  ;;  %v68_v8 = vld [vmem:[#allocation2 + $0x50] sm:$0xff]  ;;  %v62_v9 = vld [vmem:[#allocation2 + $0x20] sm:$0xff]  ;;  %s419_s4 = smov 512   ;;  %s420_s5 = smov 32  }
  0x11   :  { %v75_v6 = vadd.f32 %v74_v3, %v60_v2  ;;  %v83_v10 = vadd.f32 %v67_v7, %v66_v5  ;;  %v69_v12 = vld [vmem:[#allocation2 + $0x58] sm:$0xff]  ;;  %v63_v13 = vld [vmem:[#allocation2 + $0x28] sm:$0xff]  ;;  %v70_v16 = vld [vmem:[#allocation2 + $0x60] sm:$0xff] }
  0x12   :  { %v64_v17 = vld [vmem:[#allocation2 + $0x30] sm:$0xff]  ;;  %v71_v20 = vld [vmem:[#allocation2 + $0x68] sm:$0xff]  ;;  %v65_v21 = vld [vmem:[#allocation2 + $0x38] sm:$0xff] }
  0x13   :  { %v76_v11 = vadd.f32 %v75_v6, %v61_v4  ;;  %v84_v14 = vadd.f32 %v83_v10, %v68_v8  ;;  %v72_v24 = vld [vmem:[#allocation2 + $0x70] sm:$0xff]  ;;  %v73_v28 = vld [vmem:[#allocation2 + $0x78] sm:$0xff] }
  0x15   :  { %v77_v15 = vadd.f32 %v76_v11, %v62_v9  ;;  %v85_v18 = vadd.f32 %v84_v14, %v69_v12  ;;  %v305_v31 = vpop.eup %304 }
  0x16   :  { %v93_v32 = vmul.f32 1024.0, %v305_v31  ;;  %vm97_vm0 = vweird.f32 %v305_v31 }
  0x17   :  { %v78_v19 = vadd.f32 %v77_v15, %v63_v13  ;;  %v86_v22 = vadd.f32 %v85_v18, %v70_v16 }
  0x18   :  { %v94_v33 = vsub.f32 1.0, %v93_v32 }
  0x19   :  { %v79_v23 = vadd.f32 %v78_v19, %v64_v17  ;;  %v87_v25 = vadd.f32 %v86_v22, %v71_v20 }
  0x1a   :  { %v95_v34 = vmul.f32 %v305_v31, %v94_v33  ;;  %v519_v33 = vld [vmem:[#allocation7] sm:$0xff] }
  0x1b   :  { %v80_v26 = vadd.f32 %v79_v23, %v65_v21  ;;  %v88_v27 = vadd.f32 %v87_v25, %v72_v24 }
  0x1c   :  { %v96_v35 = vadd.f32 %v305_v31, %v95_v34 }
  0x1d   :  { %81 = vadd.xlane.f32.xlu0 %v80_v26  ;;  %v89_v29 = vadd.f32 %v88_v27, %v73_v28 }
  0x1e   :  { %v98_v36 = vsel %vm97_vm0, %v305_v31, %v96_v35  ;;  %v517_v31 = vld [vmem:[#allocation5] sm:$0xff] }
  0x1f   :  { %v193_v35 = vperm.slane %v517_v31, 0 }
  0x25   :  { %90 = vadd.xlane.f32.xlu0 %v89_v29 }
  0x90   :  { %v82_v37 = vpop.xlane.xlu0 %81 }
  0x91   :  { %v99_v38 = vmul.f32 %v98_v36, %v82_v37  ;;  %v194_v37 = vperm.slane %v517_v31, 1 }
  0x93   :  { %v450_v39 = vsub.f32 %v58_v0, %v99_v38  ;;  %v452_v40 = vsub.f32 %v59_v1, %v99_v38  ;;  %v454_v41 = vsub.f32 %v60_v2, %v99_v38  ;;  %v456_v42 = vsub.f32 %v61_v4, %v99_v38 }
  0x94   :  { %v462_v45 = vsub.f32 %v62_v9, %v99_v38  ;;  %v466_v49 = vsub.f32 %v63_v13, %v99_v38  ;;  %v470_v53 = vsub.f32 %v64_v17, %v99_v38  ;;  %v480_v59 = vsub.f32 %v65_v21, %v99_v38 }
  0x95   :  { %v117_v43 = vmul.f32 %v450_v39, %v450_v39  ;;  %v118_v44 = vmul.f32 %v452_v40, %v452_v40  ;;  %v119_v46 = vmul.f32 %v454_v41, %v454_v41  ;;  %v120_v51 = vmul.f32 %v456_v42, %v456_v42 }
  0x96   :  { %v121_v54 = vmul.f32 %v462_v45, %v462_v45  ;;  %v122_v60 = vmul.f32 %v466_v49, %v466_v49  ;;  %v123_v1 = vmul.f32 %v470_v53, %v470_v53  ;;  %v124_v6 = vmul.f32 %v480_v59, %v480_v59 }
  0x97   :  { %v133_v47 = vadd.f32 %v118_v44, %v117_v43  ;;  %v195_v38 = vperm.slane %v517_v31, 2  ;;  %v197_v43 = vperm.slane %v517_v31, 4 }
  0x98   :  { %v91_v48 = vpop.xlane.xlu0 %90 }
  0x99   :  { %v100_v50 = vmul.f32 %v98_v36, %v91_v48  ;;  %v134_v52 = vadd.f32 %v133_v47, %v119_v46  ;;  %v198_v47 = vperm.slane %v517_v31, 5  ;;  %v199_v48 = vperm.slane %v517_v31, 6 }
  0x9b   :  { %v135_v55 = vadd.f32 %v134_v52, %v120_v51  ;;  %v474_v56 = vsub.f32 %v66_v5, %v100_v50  ;;  %v476_v57 = vsub.f32 %v67_v7, %v100_v50  ;;  %v478_v58 = vsub.f32 %v68_v8, %v100_v50 }
  0x9c   :  { %v484_v62 = vsub.f32 %v69_v12, %v100_v50  ;;  %v492_v3 = vsub.f32 %v70_v16, %v100_v50  ;;  %v498_v8 = vsub.f32 %v71_v20, %v100_v50  ;;  %v502_v12 = vsub.f32 %v72_v24, %v100_v50 }
  0x9d   :  { %v136_v61 = vadd.f32 %v135_v55, %v121_v54  ;;  %v125_v63 = vmul.f32 %v474_v56, %v474_v56  ;;  %v126_v0 = vmul.f32 %v476_v57, %v476_v57  ;;  %v127_v4 = vmul.f32 %v478_v58, %v478_v58 }
  0x9e   :  { %v128_v9 = vmul.f32 %v484_v62, %v484_v62  ;;  %v129_v13 = vmul.f32 %v492_v3, %v492_v3  ;;  %v506_v15 = vsub.f32 %v73_v28, %v100_v50  ;;  %v130_v16 = vmul.f32 %v498_v8, %v498_v8 }
  0x9f   :  { %v137_v2 = vadd.f32 %v136_v61, %v122_v60  ;;  %v142_v5 = vadd.f32 %v126_v0, %v125_v63  ;;  %v131_v18 = vmul.f32 %v502_v12, %v502_v12  ;;  %v200_v50 = vperm.slane %v517_v31, 7 }
  0xa0   :  { %v132_v20 = vmul.f32 %v506_v15, %v506_v15  ;;  %v227_v51 = vperm.slane %v519_v33, 0  ;;  %v228_v52 = vperm.slane %v519_v33, 1  ;;  %v229_v60 = vperm.slane %v519_v33, 2 }
  0xa1   :  { %v138_v7 = vadd.f32 %v137_v2, %v123_v1  ;;  %v143_v10 = vadd.f32 %v142_v5, %v127_v4  ;;  %v230_v61 = vperm.slane %v519_v33, 3  ;;  %v231_v63 = vperm.slane %v519_v33, 4 }
  0xa2   :  { %v232_v0 = vperm.slane %v519_v33, 5  ;;  %v233_v1 = vperm.slane %v519_v33, 6  ;;  %v234_v2 = vperm.slane %v519_v33, 7 }
  0xa3   :  { %v139_v11 = vadd.f32 %v138_v7, %v124_v6  ;;  %v144_v14 = vadd.f32 %v143_v10, %v128_v9 }
  0xa5   :  { %140 = vadd.xlane.f32.xlu1 %v139_v11  ;;  %v145_v17 = vadd.f32 %v144_v14, %v129_v13 }
  0xa7   :  { %v146_v19 = vadd.f32 %v145_v17, %v130_v16 }
  0xa9   :  { %v147_v21 = vadd.f32 %v146_v19, %v131_v18 }
  0xab   :  { %v148_v22 = vadd.f32 %v147_v21, %v132_v20 }
  0xad   :  { %149 = vadd.xlane.f32.xlu1 %v148_v22 }
 0x118   :  { %v141_v23 = vpop.xlane.xlu1 %140 }
 0x119   :  { %v151_v24 = vmul.f32 %v141_v23, %v98_v36 }
 0x11b   :  { %v153_v25 = vadd.f32 1e-12, %v151_v24 }
 0x11d   :  { %306 = vrsqrt.f32 %v153_v25  ;;  %vm161_vm2 = vweird.f32 %v153_v25 }
 0x120   :  { %v150_v26 = vpop.xlane.xlu1 %149 }
 0x121   :  { %v152_v27 = vmul.f32 %v150_v26, %v98_v36  ;;  %v196_v36 = vperm.slane %v517_v31, 3 }
 0x123   :  { %v307_v28 = vpop.eup %306  ;;  %v514_v29 = vadd.f32 1e-12, %v152_v27 }
 0x124   :  { %v156_v30 = vmul.f32 %v307_v28, %v153_v25  ;;  %vm162_vm1 = vweird.f32 %v307_v28 }
 0x125   :  { %308 = vrsqrt.f32 %v514_v29  ;;  %vm163_vm3 = vmor %vm161_vm2, %vm162_vm1  ;;  %vm171_vm5 = vweird.f32 %v514_v29 }
 0x126   :  { %v157_v32 = vmul.f32 %v307_v28, %v156_v30 }
 0x128   :  { %v158_v34 = vmul.f32 0.5, %v157_v32 }
 0x12a   :  { %v159_v44 = vsub.f32 1.5, %v158_v34 }
 0x12b   :  { %v309_v46 = vpop.eup %308 }
 0x12c   :  { %v160_v54 = vmul.f32 %v307_v28, %v159_v44  ;;  %v166_v55 = vmul.f32 %v309_v46, %v514_v29  ;;  %vm172_vm4 = vweird.f32 %v309_v46 }
 0x12d   :  { %vm173_vm6 = vmor %vm171_vm5, %vm172_vm4 }
 0x12e   :  { %v164_v4 = vsel %vm163_vm3, %v307_v28, %v160_v54  ;;  %v167_v5 = vmul.f32 %v309_v46, %v166_v55 }
 0x12f   :  { %v175_v6 = vmul.f32 %v164_v4, %v450_v39  ;;  %v176_v7 = vmul.f32 %v164_v4, %v452_v40  ;;  %v177_v9 = vmul.f32 %v164_v4, %v454_v41  ;;  %v178_v10 = vmul.f32 %v164_v4, %v456_v42 }
 0x130   :  { %v179_v11 = vmul.f32 %v164_v4, %v462_v45  ;;  %v180_v13 = vmul.f32 %v164_v4, %v466_v49  ;;  %v181_v14 = vmul.f32 %v164_v4, %v470_v53  ;;  %v182_v16 = vmul.f32 %v164_v4, %v480_v59 }
 0x131   :  { %v209_v17 = vmul.f32 %v193_v35, %v175_v6  ;;  %v210_v39 = vmul.f32 %v194_v37, %v176_v7  ;;  %v211_v40 = vmul.f32 %v195_v38, %v177_v9  ;;  %v212_v41 = vmul.f32 %v196_v36, %v178_v10 }
 0x132   :  { %v213_v42 = vmul.f32 %v197_v43, %v179_v11  ;;  %v214_v45 = vmul.f32 %v198_v47, %v180_v13  ;;  %v215_v49 = vmul.f32 %v199_v48, %v181_v14  ;;  %v216_v53 = vmul.f32 %v200_v50, %v182_v16 }
 0x133   :  { %v243_v59 = vadd.f32 %v227_v51, %v209_v17  ;;  %v244_v18 = vadd.f32 %v228_v52, %v210_v39  ;;  %v245_v19 = vadd.f32 %v229_v60, %v211_v40  ;;  %v246_v20 = vadd.f32 %v230_v61, %v212_v41 }
 0x134   :  { %v247_v21 = vadd.f32 %v231_v63, %v213_v42  ;;  %v248_v22 = vadd.f32 %v232_v0, %v214_v45  ;;  %v249_v23 = vadd.f32 %v233_v1, %v215_v49  ;;  %v250_v24 = vadd.f32 %v234_v2, %v216_v53 }
 0x135   :  { %v259_v25 = vpack.c.bf16 %v244_v18, %v243_v59  ;;  %v260_v26 = vpack.c.bf16 %v246_v20, %v245_v19  ;;  %v168_v27 = vmul.f32 0.5, %v167_v5 }
 0x136   :  { %v261_v28 = vpack.c.bf16 %v248_v22, %v247_v21  ;;  %v262_v30 = vpack.c.bf16 %v250_v24, %v249_v23 }
 0x137   :  { %267 = vst [vmem:[#allocation8] sm:$0xff] %v259_v25  ;;  %v169_v32 = vsub.f32 1.5, %v168_v27 }
 0x138   :  { %268 = vst [vmem:[#allocation8 + $0x8] sm:$0xff] %v260_v26 }
 0x139   :  { %269 = vst [vmem:[#allocation8 + $0x10] sm:$0xff] %v261_v28  ;;  %v170_v34 = vmul.f32 %v309_v46, %v169_v32 }
 0x13a   :  { %270 = vst [vmem:[#allocation8 + $0x18] sm:$0xff] %v262_v30 }
 0x13b   :  { %v174_v44 = vsel %vm173_vm6, %v309_v46, %v170_v34 }
 0x13c   :  { %v183_v54 = vmul.f32 %v174_v44, %v474_v56  ;;  %v184_v55 = vmul.f32 %v174_v44, %v476_v57  ;;  %v185_v4 = vmul.f32 %v174_v44, %v478_v58  ;;  %v186_v5 = vmul.f32 %v174_v44, %v484_v62 }
 0x13d   :  { %v187_v6 = vmul.f32 %v174_v44, %v492_v3  ;;  %v188_v7 = vmul.f32 %v174_v44, %v498_v8  ;;  %v189_v9 = vmul.f32 %v174_v44, %v502_v12  ;;  %v190_v10 = vmul.f32 %v174_v44, %v506_v15 }
 0x13e   :  { %v217_v29 = vmul.f32 %v193_v35, %v183_v54  ;;  %v218_v56 = vmul.f32 %v194_v37, %v184_v55  ;;  %v219_v57 = vmul.f32 %v195_v38, %v185_v4  ;;  %v220_v58 = vmul.f32 %v196_v36, %v186_v5 }
 0x13f   :  { %v221_v62 = vmul.f32 %v197_v43, %v187_v6  ;;  %v222_v3 = vmul.f32 %v198_v47, %v188_v7  ;;  %v223_v8 = vmul.f32 %v199_v48, %v189_v9  ;;  %v224_v12 = vmul.f32 %v200_v50, %v190_v10 }
 0x140   :  { %v251_v15 = vadd.f32 %v227_v51, %v217_v29  ;;  %v252_v35 = vadd.f32 %v228_v52, %v218_v56  ;;  %v253_v37 = vadd.f32 %v229_v60, %v219_v57  ;;  %v254_v38 = vadd.f32 %v230_v61, %v220_v58 }
 0x141   :  { %v255_v36 = vadd.f32 %v231_v63, %v221_v62  ;;  %v256_v43 = vadd.f32 %v232_v0, %v222_v3  ;;  %v257_v31 = vadd.f32 %v233_v1, %v223_v8  ;;  %v258_v46 = vadd.f32 %v234_v2, %v224_v12 }
 0x142   :  { %v263_v47 = vpack.c.bf16 %v252_v35, %v251_v15  ;;  %v264_v48 = vpack.c.bf16 %v254_v38, %v253_v37 }
 0x143   :  { %v265_v50 = vpack.c.bf16 %v256_v43, %v255_v36  ;;  %v266_v51 = vpack.c.bf16 %v258_v46, %v257_v31 }
 0x144   :  { %271 = vst [vmem:[#allocation8 + $0x20] sm:$0xff] %v263_v47 }
 0x145   :  { %272 = vst [vmem:[#allocation8 + $0x28] sm:$0xff] %v264_v48 }
 0x146   :  { %273 = vst [vmem:[#allocation8 + $0x30] sm:$0xff] %v265_v50 }
 0x147   :  { %274 = vst [vmem:[#allocation8 + $0x38] sm:$0xff] %v266_v51 }
 0x148   :  { %287 = dma.vmem_to_hbm [thread:$0]  %s280_s2, 1024, %s282_s30, [#allocation4], %s419_s4, %s419_s4, %s420_s5  }
 0x149   :  { %410 = dma.done.wait [#allocation4], 1024  }
 0x14a   :  { %411 = vsyncadd [#allocation4], 4294966272 }
 0x14b   :  { %292 = vsyncpa [#allocation3], 1 }
 0x14c   :  { %293 = vsyncpa [#allocation6], 1 }
 0x14d   :  { %294 = vsyncpa [#allocation4], 1 }

</bundles_post_ra>
